<compile_context>
chip_gen: v7x
topology: tpu7x:2x2x1
jax: 0.10.0
libtpu: 0.0.40
codegen_flags: <defaults>
</compile_context>

<pallas_src>
import jax
import jax.numpy as jnp
from jax.experimental import pallas as pl
from jax.experimental.pallas import tpu as pltpu


_LANE = 128
_SUBLANE = 8
_VMEM_BUDGET = 24 * 1024 * 1024       # live working set (double-buffered tiles)
_VMEM_LIMIT = 32 * 1024 * 1024        # explicit scoped-VMEM request (v5e default is 16 MiB)
_MIN_PALLAS_ELEMS = 64 * 1024         # below this, launch overhead dominates -> plain jnp


def _round_up(x, m):
    return ((x + m - 1) // m) * m


def _pick_tiles(B, S, ids_bytes, mask_bytes):
    """Choose (tb, ts) and the padded (B_pad, S_pad)."""
    # Sequence tile: multiple of 128 lanes, capped so padding waste stays small.
    s128 = _round_up(S, _LANE)
    if s128 <= 2048:
        ts = s128
    else:
        ts = _LANE
        for cand in (2048, 1024, 512, 256, 128):
            pad = _round_up(S, cand) - S
            if pad * 8 <= S:           # <= ~12.5% wasted read traffic from padding
                ts = cand
                break
    s_pad = _round_up(S, ts)

    # Batch tile: multiple of 8 sublanes, sized against the live-VMEM budget.
    per_elem = 2 * (ids_bytes + mask_bytes)          # double-buffered ids + mask tiles
    max_rows = max(_SUBLANE, (_VMEM_BUDGET // (per_elem * ts)) // _SUBLANE * _SUBLANE)
    tb = min(max_rows, 1024, _round_up(B, _SUBLANE))
    if B >= 64:
        # Keep >= 2 blocks on the "parallel" batch axis so v7x megacore splits it.
        tb = min(tb, _round_up((B + 1) // 2, _SUBLANE))
    tb = max(tb, _SUBLANE)
    b_pad = _round_up(B, tb)
    return tb, ts, b_pad, s_pad


def reward_kernel(ids_ref, mask_ref, rs_ref, acc_ref):
    """One (tb, ts) tile: lane-dense accumulation over S; emit rs at the last S tile."""
    j = pl.program_id(1)                       # sequence (reduction) axis, last + "arbitrary"

    @pl.when(j == 0)
    def _init():
        acc_ref[...] = jnp.zeros_like(acc_ref)

    ids = ids_ref[...]                         # (tb, ts) int32
    keep = mask_ref[...] != 0                  # any mask dtype -> bool, pure VPU
    prod = jnp.where(keep, ids, 0)             # (tb, ts) int32

    ts = prod.shape[1]                         # multiple of 128 by construction
    part = prod[:, :_LANE]                     # lane-aligned 128-wide chunks: VPU adds,
    for c in range(1, ts // _LANE):            # no per-step cross-lane (XLU) reduce
        part = part + prod[:, c * _LANE:(c + 1) * _LANE]
    acc_ref[...] += part                       # (tb, 128) lane-dense accumulator

    @pl.when(j == pl.num_programs(1) - 1)
    def _finalize():
        # Single cross-lane reduce per batch tile, then the only HBM write: (tb, 1).
        rs_ref[...] = jnp.sum(acc_ref[...], axis=-1, keepdims=True).astype(rs_ref.dtype)


def reward_function_forward(input_ids, attention_mask=None, *, force_pallas=False):
    """Pallas implementation of RewardFunction.forward.

    Returns (rewards (B, S, 1), rs (B,), last_idx (B,)) matching the PyTorch
    module's output structure (torch.long -> int32 on TPU).
    """
    B, S = input_ids.shape
    out_dtype = input_ids.dtype

    if attention_mask is None:
        attention_mask = jnp.ones((B, S), jnp.int8)

    # Tiny-shape fast path: a fused XLA reduce beats kernel-launch overhead.
    if B * S < _MIN_PALLAS_ELEMS and not force_pallas:
        rs = jnp.sum(jnp.where(attention_mask != 0, input_ids.astype(jnp.int32), 0),
                     axis=-1).astype(out_dtype)
    else:
        ids = input_ids.astype(jnp.int32)
        mask = attention_mask
        mask_bytes = mask.dtype.itemsize
        tb, ts, b_pad, s_pad = _pick_tiles(B, S, 4, mask_bytes)

        if b_pad != B or s_pad != S:
            # Padded rows/cols carry mask == 0, so they contribute nothing to rs.
            ids = jnp.pad(ids, ((0, b_pad - B), (0, s_pad - S)))
            mask = jnp.pad(mask, ((0, b_pad - B), (0, s_pad - S)))

        grid = (b_pad // tb, s_pad // ts)

        rs_col = pl.pallas_call(
            reward_kernel,
            grid_spec=pltpu.PrefetchScalarGridSpec(
                num_scalar_prefetch=0,
                grid=grid,
                in_specs=[
                    pl.BlockSpec((tb, ts), lambda i, j: (i, j)),
                    pl.BlockSpec((tb, ts), lambda i, j: (i, j)),
                ],
                # rs block is resident across the reduction axis; written at finalize only.
                out_specs=pl.BlockSpec((tb, 1), lambda i, j: (i, 0)),
                scratch_shapes=[pltpu.VMEM((tb, _LANE), jnp.int32)],
            ),
            out_shape=jax.ShapeDtypeStruct((b_pad, 1), jnp.int32),
            compiler_params=pltpu.CompilerParams(
                dimension_semantics=("parallel", "arbitrary"),
                vmem_limit_bytes=_VMEM_LIMIT,
            ),
            cost_estimate=pl.CostEstimate(
                flops=2 * b_pad * s_pad,
                transcendentals=0,
                bytes_accessed=b_pad * s_pad * (4 + mask_bytes) + b_pad * 4,
            ),
        )(ids, mask)

        rs = rs_col[:B, 0].astype(out_dtype)

    # Dense rewards slab built (and fused) by XLA in the wrapper, not written by the kernel.
    rewards = jnp.zeros((B, S, 1), out_dtype).at[:, -1, 0].set(rs)
    last_idx = jnp.full((B,), S - 1, jnp.int32)
    return rewards, rs, last_idx


def _check(input_ids, attention_mask, **kw):
    B, S = input_ids.shape
    rewards, rs, last_idx = reward_function_forward(input_ids, attention_mask, **kw)
    jax.block_until_ready((rewards, rs, last_idx))

    rs_ref = jnp.sum(jnp.where(attention_mask != 0, input_ids, 0),
                     axis=-1).astype(input_ids.dtype)
    rewards_ref = jnp.zeros((B, S, 1), input_ids.dtype).at[:, -1, 0].set(rs_ref)

    assert rewards.shape == (B, S, 1) and rs.shape == (B,) and last_idx.shape == (B,)
    assert jnp.array_equal(rewards, rewards_ref)
    assert jnp.array_equal(rs, rs_ref)
    assert jnp.array_equal(last_idx, jnp.full((B,), S - 1, jnp.int32))


if __name__ == "__main__":
    key = jax.random.PRNGKey(0)
    k1, k2, k3, k4 = jax.random.split(key, 4)

    # 1) toy shape matching the module's usage -> jnp fast path.
    ids_a = jax.random.randint(k1, (2, 8), 0, 100, dtype=jnp.int32)
    mask_a = (jax.lax.broadcasted_iota(jnp.int32, (2, 8), 1)
              < jnp.array([[8], [4]], jnp.int32)).astype(jnp.int32)
    _check(ids_a, mask_a)

    # 2) Pallas path, no padding: grid (2, 1) -> batch axis split across two blocks.
    ids_b = jax.random.randint(k2, (64, 1024), 0, 32000, dtype=jnp.int32)
    lens_b = jax.random.randint(k3, (64, 1), 1, 1025, dtype=jnp.int32)
    mask_b = (jax.lax.broadcasted_iota(jnp.int32, (64, 1024), 1) < lens_b).astype(jnp.int32)
    _check(ids_b, mask_b)

    # 3) ragged shape forced through the Pallas path: exercises B/S padding and
    #    the S-axis accumulator across 3 sequence tiles (grid (1, 3)).
    ids_c = jax.random.randint(k4, (10, 3000), 0, 32000, dtype=jnp.int32)
    mask_c = (jax.lax.broadcasted_iota(jnp.int32, (10, 3000), 1)
              < (jnp.arange(1, 11, dtype=jnp.int32)[:, None] * 300)).astype(jnp.int32)
    _check(ids_c, mask_c, force_pallas=True)

    print("KERNEL_OK")
</pallas_src>

<mosaic_0001>
module attributes {stable_mosaic.version = 11 : i64} {
  func.func @reward_kernel(%arg0: i32, %arg1: i32, %arg2: memref<32x1024xi32, #tpu.memory_space<vmem>>, %arg3: memref<32x1024xi32, #tpu.memory_space<vmem>>, %arg4: memref<32x1xi32, #tpu.memory_space<vmem>>, %arg5: memref<32x128xi32, #tpu.memory_space<vmem>>) attributes {dimension_semantics = [#tpu.dimension_semantics<parallel>, #tpu.dimension_semantics<arbitrary>], iteration_bounds = array<i64: 2, 1>, scalar_prefetch = 0 : i64, scratch_operands = 1 : i64, tpu.core_type = #tpu.core_type<tc>, window_params = [{transform_indices = @transform_0, window_bounds = array<i64: 32, 1024>}, {transform_indices = @transform_1, window_bounds = array<i64: 32, 1024>}, {transform_indices = @transform_2, window_bounds = array<i64: 32, 1>}]} {
    %c0_i32 = arith.constant 0 : i32
    %0 = arith.cmpi eq, %arg1, %c0_i32 : i32
    %1 = arith.extui %0 : i1 to i32
    %c0_i32_0 = arith.constant 0 : i32
    %2 = arith.cmpi ne, %1, %c0_i32_0 : i32
    scf.if %2 {
      %c0_i32_12 = arith.constant 0 : i32
      %30 = vector.broadcast %c0_i32_12 : i32 to vector<32x128xi32>
      %c0_13 = arith.constant 0 : index
      %c0_14 = arith.constant 0 : index
      %31 = vector.load %arg5[%c0_13, %c0_14] : memref<32x128xi32, #tpu.memory_space<vmem>>, vector<32x128xi32>
      tpu.vector_store %arg5[%c0_13, %c0_14], %30 {strides = array<i32>} : memref<32x128xi32, #tpu.memory_space<vmem>>, vector<32x128xi32>,
    } else {
    }
    %c0 = arith.constant 0 : index
    %c0_1 = arith.constant 0 : index
    %3 = vector.load %arg2[%c0, %c0_1] : memref<32x1024xi32, #tpu.memory_space<vmem>>, vector<32x1024xi32>
    %c0_2 = arith.constant 0 : index
    %c0_3 = arith.constant 0 : index
    %4 = vector.load %arg3[%c0_2, %c0_3] : memref<32x1024xi32, #tpu.memory_space<vmem>>, vector<32x1024xi32>
    %c0_i32_4 = arith.constant 0 : i32
    %5 = vector.broadcast %c0_i32_4 : i32 to vector<32x1024xi32>
    %6 = arith.cmpi ne, %4, %5 : vector<32x1024xi32>
    %c0_i32_5 = arith.constant 0 : i32
    %7 = vector.broadcast %c0_i32_5 : i32 to vector<32x1024xi32>
    %8 = arith.select %6, %3, %7 : vector<32x1024xi1>, vector<32x1024xi32>
    %9 = vector.extract_strided_slice %8 {offsets = [0, 0], sizes = [32, 128], strides = [1, 1]} : vector<32x1024xi32> to vector<32x128xi32>
    %10 = vector.extract_strided_slice %8 {offsets = [0, 128], sizes = [32, 128], strides = [1, 1]} : vector<32x1024xi32> to vector<32x128xi32>
    %11 = arith.addi %9, %10 : vector<32x128xi32>
    %12 = vector.extract_strided_slice %8 {offsets = [0, 256], sizes = [32, 128], strides = [1, 1]} : vector<32x1024xi32> to vector<32x128xi32>
    %13 = arith.addi %11, %12 : vector<32x128xi32>
    %14 = vector.extract_strided_slice %8 {offsets = [0, 384], sizes = [32, 128], strides = [1, 1]} : vector<32x1024xi32> to vector<32x128xi32>
    %15 = arith.addi %13, %14 : vector<32x128xi32>
    %16 = vector.extract_strided_slice %8 {offsets = [0, 512], sizes = [32, 128], strides = [1, 1]} : vector<32x1024xi32> to vector<32x128xi32>
    %17 = arith.addi %15, %16 : vector<32x128xi32>
    %18 = vector.extract_strided_slice %8 {offsets = [0, 640], sizes = [32, 128], strides = [1, 1]} : vector<32x1024xi32> to vector<32x128xi32>
    %19 = arith.addi %17, %18 : vector<32x128xi32>
    %20 = vector.extract_strided_slice %8 {offsets = [0, 768], sizes = [32, 128], strides = [1, 1]} : vector<32x1024xi32> to vector<32x128xi32>
    %21 = arith.addi %19, %20 : vector<32x128xi32>
    %22 = vector.extract_strided_slice %8 {offsets = [0, 896], sizes = [32, 128], strides = [1, 1]} : vector<32x1024xi32> to vector<32x128xi32>
    %23 = arith.addi %21, %22 : vector<32x128xi32>
    %c0_6 = arith.constant 0 : index
    %c0_7 = arith.constant 0 : index
    %24 = vector.load %arg5[%c0_6, %c0_7] : memref<32x128xi32, #tpu.memory_space<vmem>>, vector<32x128xi32>
    %25 = arith.addi %24, %23 : vector<32x128xi32>
    %c0_8 = arith.constant 0 : index
    %c0_9 = arith.constant 0 : index
    %26 = vector.load %arg5[%c0_8, %c0_9] : memref<32x128xi32, #tpu.memory_space<vmem>>, vector<32x128xi32>
    tpu.vector_store %arg5[%c0_8, %c0_9], %25 {strides = array<i32>} : memref<32x128xi32, #tpu.memory_space<vmem>>, vector<32x128xi32>,
    %c0_i32_10 = arith.constant 0 : i32
    %27 = arith.cmpi eq, %arg1, %c0_i32_10 : i32
    %28 = arith.extui %27 : i1 to i32
    %c0_i32_11 = arith.constant 0 : i32
    %29 = arith.cmpi ne, %28, %c0_i32_11 : i32
    scf.if %29 {
      %c0_12 = arith.constant 0 : index
      %c0_13 = arith.constant 0 : index
      %30 = vector.load %arg5[%c0_12, %c0_13] : memref<32x128xi32, #tpu.memory_space<vmem>>, vector<32x128xi32>
      %cst = arith.constant dense<0> : vector<32xi32>
      %31 = vector.multi_reduction <add>, %30, %cst [1] : vector<32x128xi32> to vector<32xi32>
      %32 = vector.shape_cast %31 : vector<32xi32> to vector<32x1xi32>
      %c0_14 = arith.constant 0 : index
      %c0_15 = arith.constant 0 : index
      %33 = vector.load %arg4[%c0_14, %c0_15] : memref<32x1xi32, #tpu.memory_space<vmem>>, vector<32x1xi32>
      tpu.vector_store %arg4[%c0_14, %c0_15], %32 {strides = array<i32>} : memref<32x1xi32, #tpu.memory_space<vmem>>, vector<32x1xi32>,
    } else {
    }
    return
  }
  func.func @transform_0(%arg0: i32, %arg1: i32) -> (i32, i32) {
    %c0_i32 = arith.constant 0 : i32
    return %arg0, %arg1 : i32, i32
  }
  func.func @transform_1(%arg0: i32, %arg1: i32) -> (i32, i32) {
    %c0_i32 = arith.constant 0 : i32
    return %arg0, %arg1 : i32, i32
  }
  func.func @transform_2(%arg0: i32, %arg1: i32) -> (i32, i32) {
    %c0_i32 = arith.constant 0 : i32
    %c0_i32_0 = arith.constant 0 : i32
    return %arg0, %c0_i32 : i32, i32
  }
}

</mosaic_0001>

<bundles_post_ra>
// kernel: tpu_custom_call.1
= control target key start
LH: loop header
LB: loop body
LE: loop exit
PB: predicated region body
PF: predicated region fallthrough
CT: control target
= control target key end

     0   :  { %7 = vsyncpa [#allocation4], 0  ;;  %s1063_s0 = inlined_call_operand.hbm [shape: s32[64,1024], index: 0, kind: input, shape index: {}]   ;;  %s1064_s1 = inlined_call_operand.hbm [shape: s32[64,1024], index: 1, kind: input, shape index: {}]   ;;  %s1065_s2 = inlined_call_operand.vmem [shape: s32[64,1], index: 2, kind: output, shape index: {}]  }
   0x1   :  { %9 = vsyncpa [#allocation4 + $0x1], 0 }
   0x2   :  { %10 = vsyncpa [#allocation6], 0 }
   0x3   :  { %12 = vsyncpa [#allocation6 + $0x1], 0  ;;  %s792_s9 = smov 0   ;;  %s794_s10 = smov 0  }
   0x4   :  { %s796_s11 = smov 0   ;;  %s798_s12 = smov 0  }
   0x5   :  { %s800_s13 = smov 0   ;;  %s802_s14 = smov 0  }
   0x6 LB: > { %s572_s15 = sadd.s32 4294967295, %s771_s14   ;;  %s30_s16 = sadd.s32 1, %s767_s13  ;;  %s771_s14 = sphi %s802_s14, %s18_s14   ;;  %s767_s13 = sphi %s800_s13, %s1076_s13   ;;  %s763_s12 = sphi %s798_s12, %s1075_s12   ;;  %s759_s11 = sphi %s796_s11, %s1074_s11   ;;  %s755_s10 = sphi %s794_s10, %s1073_s10   ;;  %s751_s9 = sphi %s792_s9, %s1072_s9  }
   0x7   : > { %p32_p0 = scmp.ge.s32.totalorder %s30_s16, 2  ;;  %s39_s17 = sadd.s32 1, %s759_s11 }
   0x8   : > { %p46_p1 = scmp.ne.s32.totalorder %s759_s11, %s755_s10  ;;  %p47_p2 = scmp.eq.s32.totalorder %s771_s14, 0 }
   0x9   : > { %s1078_s16 = smov (%p32_p0, %s30_s16), 0  ;;  %p52_p4 = scmp.ne.s32.totalorder %s755_s10, %s751_s9 }
   0xa   : > { %p828_p3 = por %p47_p2, %p46_p1  ;;  %s34_s19 = ssub.s32 %s767_s13, %s1078_s16 }
   0xb   : > { %p53_p5 = scmp.eq.s32.totalorder %s572_s15, 0  ;;  %p37_p6 = scmp.eq.s32.totalorder %s34_s19, 0 }
   0xc   : > { %p606_p8 = scmp.lt.s32.totalorder %s771_s14, 2  ;;  %s844_s22 = sand.u32 1, %s759_s11  }
   0xd   : > { %p835_p7 = por %p53_p5, %p52_p4  ;;  %s592_s23 = sshll.u32 %s767_s13, 12 }
   0xe   : > { %s841_s21 = scalar_select %p37_p6, %s759_s11, %s39_s17  }
   0xf   : > { %s1068_s20 = scalar_select %p835_p7, 1, 0 }
  0x10   : > { %s576_s24 = sshll.u32 %s844_s22, 8  ;;  %s853_s27 = scalar_lea.hbm %s1063_s0, %s592_s23 }
  0x11   : > { %s134_s28 = scalar_lea.vmem [#allocation3], %s576_s24  ;;  %p859_p9 = pnand %p606_p8, %p828_p3 }
  0x12   : > { %s144_s29 = sshll.u32 %s134_s28, 4  ;;  %s131_s3 = scalar_lea.sflag [#allocation4], %s844_s22  ;;  %s863_s29 = int_to_ptr.vmem [resolvable:$true] %s144_s29 }
  0x13   : > { %s657_s4 = scalar_lea.hbm %s853_s27, 4096  ;;  %p659_p11 = pneg %p859_p9 }
  0x14   : > { %p658_p10 = scmp.ne.s32.totalorder %s853_s27, %s657_s4  ;;  %s662_s7 = scalar_lea.hbm %s1063_s0, 8192 }
  0x15   : > { %p663_p0 = scmp.lt.u32.totalorder %s853_s27, %s1063_s0  ;;  %p664_p1 = scmp.lt.u32.totalorder %s662_s7, %s657_s4 }
  0x16   : > { %p660_p12 = pnand %p659_p11, %p658_p10  ;;  %p666_p3 = scmp.lt.u32.totalorder %s657_s4, %s853_s27 }
  0x17   : > { %p665_p2 = por %p664_p1, %p663_p0 }
  0x18   : > { %p661_p13 = pneg %p660_p12 }
  0x19   : > { %p667_p4 = por %p666_p3, %p665_p2 }
  0x1b   : > { %p668_p5 = pnand %p667_p4, %p661_p13 }
  0x1d   : > { %671 = shalt.err (!%p668_p5)
}
  0x1e   : > { %s672_s15 = scalar_lea.vmem %s863_s29, 4096  ;;  %s773_s17 = smov [#allocation3]  }
  0x1f   : > { %p673_p6 = scmp.ne.s32.totalorder %s863_s29, %s672_s15  ;;  %s677_s18 = sshll.u32 %s773_s17, 4  ;;  %s678_s18 = int_to_ptr.vmem [resolvable:$false] %s677_s18 }
  0x20   : > { %s679_s19 = scalar_lea.vmem %s678_s18, 8192  ;;  %p680_p12 = scmp.lt.s32.totalorder %s863_s29, %s678_s18 }
  0x21   : > { %p675_p8 = pnand %p673_p6, %p659_p11  ;;  %p681_p0 = scmp.lt.s32.totalorder %s679_s19, %s672_s15 }
  0x23   : > { %p676_p10 = pneg %p675_p8  ;;  %p682_p1 = por %p681_p0, %p680_p12 }
  0x25   : > { %p683_p2 = pnand %p682_p1, %p676_p10 }
  0x27   : > { %686 = shalt.err (!%p683_p2)
}
  0x28   : > { %s774_s25 = smov 1024   ;;  %s775_s26 = smov 64  }
  0x29   : > { %602 = dma.hbm_to_vmem [thread:$0]  (!%p859_p9), %s853_s27, 4096, %s863_s29, %s131_s3, %s774_s25, %s774_s25, %s775_s26  }
  0x2a   : > { %p584_p13 = scmp.ge.s32.totalorder %s771_s14, 1  ;;  %p176_p3 = scmp.lt.s32.totalorder %s771_s14, 3 }
  0x2b   : > { %s907_s6 = scalar_lea.hbm %s1064_s1, %s592_s23  ;;  %s158_s7 = scalar_lea.vmem [#allocation5], %s576_s24 }
  0x2c   : > { %p898_p4 = pnand %p584_p13, %p176_p3  ;;  %s168_s8 = sshll.u32 %s158_s7, 4  ;;  %s911_s8 = int_to_ptr.vmem [resolvable:$true] %s168_s8 }
  0x2d   : > { %s155_s27 = scalar_lea.sflag [#allocation6], %s844_s22  ;;  %s687_s29 = scalar_lea.hbm %s907_s6, 4096 }
  0x2e   : > { %p688_p5 = scmp.ne.s32.totalorder %s907_s6, %s687_s29  ;;  %s692_s23 = scalar_lea.hbm %s1064_s1, 8192 }
  0x2f   : > { %p693_p10 = scmp.lt.u32.totalorder %s907_s6, %s1064_s1  ;;  %p694_p12 = scmp.lt.u32.totalorder %s692_s23, %s687_s29 }
  0x30   : > { %p690_p6 = pnand %p688_p5, %p659_p11  ;;  %p696_p1 = scmp.lt.u32.totalorder %s687_s29, %s907_s6 }
  0x31   : > { %p695_p0 = por %p694_p12, %p693_p10 }
  0x32   : > { %p691_p8 = pneg %p690_p6 }
  0x33   : > { %p697_p2 = por %p696_p1, %p695_p0 }
  0x35   : > { %p698_p13 = pnand %p697_p2, %p691_p8 }
  0x37   : > { %701 = shalt.err (!%p698_p13)
}
  0x38   : > { %s702_s24 = scalar_lea.vmem %s911_s8, 4096  ;;  %s776_s18 = smov [#allocation5]  }
  0x39   : > { %p703_p3 = scmp.ne.s32.totalorder %s911_s8, %s702_s24  ;;  %s707_s19 = sshll.u32 %s776_s18, 4  ;;  %s708_s19 = int_to_ptr.vmem [resolvable:$false] %s707_s19 }
  0x3a   : > { %s709_s4 = scalar_lea.vmem %s708_s19, 8192  ;;  %p710_p7 = scmp.lt.s32.totalorder %s911_s8, %s708_s19 }
  0x3b   : > { %p705_p5 = pnand %p703_p3, %p659_p11  ;;  %p711_p10 = scmp.lt.s32.totalorder %s709_s4, %s702_s24 }
  0x3d   : > { %p706_p6 = pneg %p705_p5  ;;  %p712_p12 = por %p711_p10, %p710_p7 }
  0x3f   : > { %p713_p0 = pnand %p712_p12, %p706_p6 }
  0x41   : > { %716 = shalt.err (!%p713_p0)
}
  0x42   : > { %605 = dma.hbm_to_vmem [thread:$0]  (!%p859_p9), %s907_s6, 4096, %s911_s8, %s155_s27, %s774_s25, %s774_s25, %s775_s26  }
  0x43   : > { %180 = sbr.rel (%p898_p4) target bundleno = 268 (0x10c), region = 28  ;;  %s182_s5 = sand.u32 (!%p898_p4), 1, %s755_s10  }
  0x44   : > { %s585_s7 = sshll.u32 (!%p898_p4), %s182_s5, 8  ;;  %s183_s29 = scalar_lea.sflag (!%p898_p4), [#allocation4], %s182_s5 }
  0x45   : > { %s945_s3 = scalar_lea.vmem (!%p898_p4), [#allocation3], %s585_s7  ;;  %p1071_p7 = scmp.ne.s32.totalorder (!%p898_p4), %s1068_s20, 0 }
  0x4a   : > { %742 = dma.done.wait (%p1071_p7), %s183_s29, 4096  }
  0x4b   : > { %744 = vsyncadd (%p1071_p7), %s183_s29, 4294963200  ;;  %s192_s22 = scalar_lea.sflag [#allocation6], %s182_s5  ;;  %s951_s30 = scalar_lea.vmem [#allocation5], %s585_s7 }
  0x4c   : > { %746 = dma.done.wait (%p1071_p7), %s192_s22, 4096  }
  0x4d   : > { %748 = vsyncadd (%p1071_p7), %s192_s22, 4294963200  ;;  %v239_v0 = vld [vmem:[%s945_s3] sm:$0xff]  ;;  %v240_v1 = vld [vmem:[%s945_s3 + $0x8] sm:$0xff]  ;;  %s587_s20 = sshll.u32 %s763_s12, 2 }
  0x4e   : > { %v271_v2 = vld [vmem:[%s951_s30] sm:$0xff]  ;;  %v272_v3 = vld [vmem:[%s951_s30 + $0x8] sm:$0xff]  ;;  %v273_v4 = vld [vmem:[%s951_s30 + $0x10] sm:$0xff]  ;;  %p226_p9 = scmp.lt.s32.totalorder %s587_s20, 7 }
  0x4f   : > { %v274_v5 = vld [vmem:[%s951_s30 + $0x18] sm:$0xff]  ;;  %vm303_vm0 = vcmp.ne.s32.totalorder %v271_v2, 0  ;;  %v241_v6 = vld [vmem:[%s945_s3 + $0x10] sm:$0xff]  ;;  %vm304_vm1 = vcmp.ne.s32.totalorder %v272_v3, 0  ;;  %vm305_vm2 = vcmp.ne.s32.totalorder %v273_v4, 0  ;;  %v275_v7 = vld [vmem:[%s951_s30 + $0x20] sm:$0xff] }
  0x50   : > { %v335_v8 = vsel %vm303_vm0, %v239_v0, 0  ;;  %v242_v9 = vld [vmem:[%s945_s3 + $0x18] sm:$0xff]  ;;  %v276_v10 = vld [vmem:[%s951_s30 + $0x28] sm:$0xff]  ;;  %vm306_vm3 = vcmp.ne.s32.totalorder %v274_v5, 0  ;;  %v336_v11 = vsel %vm304_vm1, %v240_v1, 0  ;;  %v243_v12 = vld [vmem:[%s945_s3 + $0x20] sm:$0xff] }
  0x51   : > { %v337_v13 = vsel %vm305_vm2, %v241_v6, 0  ;;  %v277_v14 = vld [vmem:[%s951_s30 + $0x30] sm:$0xff]  ;;  %vm307_vm4 = vcmp.ne.s32.totalorder %v275_v7, 0  ;;  %v367_v15 = vadd.s32 %v336_v11, %v335_v8  ;;  %v247_v16 = vld [vmem:[%s945_s3 + $0x40] sm:$0xff]  ;;  %v248_v17 = vld [vmem:[%s945_s3 + $0x48] sm:$0xff]  ;;  %vm308_vm5 = vcmp.ne.s32.totalorder %v276_v10, 0 }
  0x52   : > { %v338_v18 = vsel %vm306_vm3, %v242_v9, 0  ;;  %v279_v19 = vld [vmem:[%s951_s30 + $0x40] sm:$0xff]  ;;  %v280_v20 = vld [vmem:[%s951_s30 + $0x48] sm:$0xff]  ;;  %v281_v21 = vld [vmem:[%s951_s30 + $0x50] sm:$0xff]  ;;  %v339_v27 = vsel %vm307_vm4, %v243_v12, 0  ;;  %vm309_vm9 = vcmp.ne.s32.totalorder %v277_v14, 0 }
  0x53   : > { %v244_v22 = vld [vmem:[%s945_s3 + $0x28] sm:$0xff]  ;;  %v371_v23 = vadd.s32 %v367_v15, %v337_v13  ;;  %v249_v24 = vld [vmem:[%s945_s3 + $0x50] sm:$0xff]  ;;  %v282_v25 = vld [vmem:[%s951_s30 + $0x58] sm:$0xff]  ;;  %vm311_vm6 = vcmp.ne.s32.totalorder %v279_v19, 0  ;;  %vm312_vm7 = vcmp.ne.s32.totalorder %v280_v20, 0  ;;  %vm313_vm8 = vcmp.ne.s32.totalorder %v281_v21, 0 }
  0x54   : > { %v278_v26 = vld [vmem:[%s951_s30 + $0x38] sm:$0xff]  ;;  %v283_v28 = vld [vmem:[%s951_s30 + $0x60] sm:$0xff]  ;;  %v343_v29 = vsel %vm311_vm6, %v247_v16, 0  ;;  %v245_v30 = vld [vmem:[%s945_s3 + $0x30] sm:$0xff]  ;;  %vm314_vm10 = vcmp.ne.s32.totalorder %v282_v25, 0  ;;  %v344_v34 = vsel %vm312_vm7, %v248_v17, 0 }
  0x55   : > { %v375_v31 = vadd.s32 %v371_v23, %v338_v18  ;;  %v250_v32 = vld [vmem:[%s945_s3 + $0x58] sm:$0xff]  ;;  %v284_v33 = vld [vmem:[%s951_s30 + $0x68] sm:$0xff]  ;;  %v340_v36 = vsel %vm308_vm5, %v244_v22, 0  ;;  %v251_v37 = vld [vmem:[%s945_s3 + $0x60] sm:$0xff]  ;;  %v345_v38 = vsel %vm313_vm8, %v249_v24, 0  ;;  %vm310_vm11 = vcmp.ne.s32.totalorder %v278_v26, 0 }
  0x56   : > { %v246_v35 = vld [vmem:[%s945_s3 + $0x38] sm:$0xff]  ;;  %v252_v40 = vld [vmem:[%s945_s3 + $0x68] sm:$0xff]  ;;  %v285_v41 = vld [vmem:[%s951_s30 + $0x70] sm:$0xff]  ;;  %vm315_vm12 = vcmp.ne.s32.totalorder %v283_v28, 0  ;;  %v368_v43 = vadd.s32 %v344_v34, %v343_v29  ;;  %v341_v44 = vsel %vm309_vm9, %v245_v30, 0  ;;  %vm316_vm13 = vcmp.ne.s32.totalorder %v284_v33, 0 }
  0x57   : > { %v379_v39 = vadd.s32 %v375_v31, %v339_v27  ;;  %v286_v42 = vld [vmem:[%s951_s30 + $0x78] sm:$0xff]  ;;  %v346_v45 = vsel %vm314_vm10, %v250_v32, 0  ;;  %v287_v46 = vld [vmem:[%s951_s30 + $0x80] sm:$0xff]  ;;  %v288_v47 = vld [vmem:[%s951_s30 + $0x88] sm:$0xff]  ;;  %v342_v54 = vsel %vm310_vm11, %v246_v35, 0  ;;  %v347_v55 = vsel %vm315_vm12, %v251_v37, 0 }
  0x58   : > { %v289_v48 = vld [vmem:[%s951_s30 + $0x90] sm:$0xff]  ;;  %v372_v50 = vadd.s32 %v368_v43, %v345_v38  ;;  %v255_v51 = vld [vmem:[%s945_s3 + $0x80] sm:$0xff]  ;;  %v256_v52 = vld [vmem:[%s945_s3 + $0x88] sm:$0xff]  ;;  %vm319_vm14 = vcmp.ne.s32.totalorder %v287_v46, 0  ;;  %vm320_vm15 = vcmp.ne.s32.totalorder %v288_v47, 0  ;;  %vm317_vm1 = vcmp.ne.s32.totalorder %v285_v41, 0 }
  0x59   : > { %v383_v49 = vadd.s32 %v379_v39, %v340_v36  ;;  %v290_v53 = vld [vmem:[%s951_s30 + $0x98] sm:$0xff]  ;;  %v257_v56 = vld [vmem:[%s945_s3 + $0x90] sm:$0xff]  ;;  %vm321_vm0 = vcmp.ne.s32.totalorder %v289_v48, 0  ;;  %vm318_vm2 = vcmp.ne.s32.totalorder %v286_v42, 0  ;;  %v291_v61 = vld [vmem:[%s951_s30 + $0xa0] sm:$0xff]  ;;  %v348_v62 = vsel %vm316_vm13, %v252_v40, 0 }
  0x5a   : > { %v253_v58 = vld [vmem:[%s945_s3 + $0x70] sm:$0xff]  ;;  %v254_v59 = vld [vmem:[%s945_s3 + $0x78] sm:$0xff]  ;;  %v376_v60 = vadd.s32 %v372_v50, %v346_v45  ;;  %vm322_vm3 = vcmp.ne.s32.totalorder %v290_v53, 0  ;;  %v351_v0 = vsel %vm319_vm14, %v255_v51, 0  ;;  %v352_v1 = vsel %vm320_vm15, %v256_v52, 0  ;;  %v292_v4 = vld [vmem:[%s951_s30 + $0xa8] sm:$0xff] }
  0x5b   : > { %v387_v57 = vadd.s32 %v383_v49, %v341_v44  ;;  %v258_v63 = vld [vmem:[%s945_s3 + $0x98] sm:$0xff]  ;;  %v353_v5 = vsel %vm321_vm0, %v257_v56, 0  ;;  %v349_v6 = vsel %vm317_vm1, %v253_v58, 0  ;;  %v350_v7 = vsel %vm318_vm2, %v254_v59, 0  ;;  %v259_v8 = vld [vmem:[%s945_s3 + $0xa0] sm:$0xff]  ;;  %v296_v11 = vld [vmem:[%s951_s30 + $0xc8] sm:$0xff] }
  0x5c   : > { %v380_v3 = vadd.s32 %v376_v60, %v347_v55  ;;  %vm323_vm4 = vcmp.ne.s32.totalorder %v291_v61, 0  ;;  %v369_v9 = vadd.s32 %v352_v1, %v351_v0  ;;  %v295_v10 = vld [vmem:[%s951_s30 + $0xc0] sm:$0xff]  ;;  %v293_v15 = vld [vmem:[%s951_s30 + $0xb0] sm:$0xff]  ;;  %v354_v16 = vsel %vm322_vm3, %v258_v63, 0  ;;  %v260_v18 = vld [vmem:[%s945_s3 + $0xa8] sm:$0xff]  ;;  %s1080_s20 = smov (!%p226_p9, %s587_s20), 7 }
  0x5d   : > { %v391_v2 = vadd.s32 %v387_v57, %v342_v54  ;;  %v297_v17 = vld [vmem:[%s951_s30 + $0xd0] sm:$0xff]  ;;  %vm324_vm5 = vcmp.ne.s32.totalorder %v292_v4, 0  ;;  %v263_v20 = vld [vmem:[%s945_s3 + $0xc0] sm:$0xff]  ;;  %v264_v21 = vld [vmem:[%s945_s3 + $0xc8] sm:$0xff]  ;;  %vm327_vm6 = vcmp.ne.s32.totalorder %v295_v10, 0  ;;  %vm328_vm7 = vcmp.ne.s32.totalorder %v296_v11, 0 }
  0x5e   : > { %v384_v14 = vadd.s32 %v380_v3, %v348_v62  ;;  %v373_v19 = vadd.s32 %v369_v9, %v353_v5  ;;  %v294_v25 = vld [vmem:[%s951_s30 + $0xb8] sm:$0xff]  ;;  %v355_v26 = vsel %vm323_vm4, %v259_v8, 0  ;;  %v261_v28 = vld [vmem:[%s945_s3 + $0xb0] sm:$0xff]  ;;  %vm325_vm8 = vcmp.ne.s32.totalorder %v293_v15, 0  ;;  %v299_v33 = vld [vmem:[%s951_s30 + $0xe0] sm:$0xff]  ;;  %s588_s25 = sshll.u32 %s1080_s20, 3 }
  0x5f   : > { %v415_v12 = vshrl.u32 %v391_v2, 16  ;;  %v414_v13 = vand.u32 65535, %v391_v2  ;;  %v298_v27 = vld [vmem:[%s951_s30 + $0xd8] sm:$0xff]  ;;  %v265_v30 = vld [vmem:[%s945_s3 + $0xd0] sm:$0xff]  ;;  %vm329_vm9 = vcmp.ne.s32.totalorder %v297_v17, 0  ;;  %v356_v32 = vsel %vm324_vm5, %v260_v18, 0  ;;  %s229_s6 = scalar_lea.vmem %s1065_s2, %s588_s25 }
  0x60   : > { %v388_v24 = vadd.s32 %v384_v14, %v349_v6  ;;  %v377_v29 = vadd.s32 %v373_v19, %v354_v16  ;;  %v359_v34 = vsel %vm327_vm6, %v263_v20, 0  ;;  %v360_v35 = vsel %vm328_vm7, %v264_v21, 0  ;;  %v262_v36 = vld [vmem:[%s945_s3 + $0xb8] sm:$0xff]  ;;  %v300_v42 = vld [vmem:[%s951_s30 + $0xe8] sm:$0xff]  ;;  %v267_v45 = vld [vmem:[%s945_s3 + $0xe0] sm:$0xff] }
  0x61   : > { %v417_v22 = vcvt.s32.f32 %v415_v12  ;;  %v416_v23 = vcvt.s32.f32 %v414_v13  ;;  %vm326_vm10 = vcmp.ne.s32.totalorder %v294_v25, 0  ;;  %v266_v38 = vld [vmem:[%s945_s3 + $0xd8] sm:$0xff]  ;;  %vm330_vm11 = vcmp.ne.s32.totalorder %v298_v27, 0  ;;  %v301_v49 = vld [vmem:[%s951_s30 + $0xf0] sm:$0xff]  ;;  %v268_v52 = vld [vmem:[%s945_s3 + $0xe8] sm:$0xff] }
  0x62   : > { %v392_v31 = vadd.s32 %v388_v24, %v350_v7  ;;  %v381_v37 = vadd.s32 %v377_v29, %v355_v26  ;;  %v357_v40 = vsel %vm325_vm8, %v261_v28, 0  ;;  %v361_v43 = vsel %vm329_vm9, %v265_v30, 0  ;;  %v302_v55 = vld [vmem:[%s951_s30 + $0xf8] sm:$0xff]  ;;  %v269_v58 = vld [vmem:[%s945_s3 + $0xf0] sm:$0xff] }
  0x63   : > { %420 = vadd.xlane.f32.xlu0 %v417_v22  ;;  %418 = vadd.xlane.f32.xlu1 %v416_v23  ;;  %vm331_vm12 = vcmp.ne.s32.totalorder %v299_v33, 0  ;;  %v370_v46 = vadd.s32 %v360_v35, %v359_v34  ;;  %v358_v48 = vsel %vm326_vm10, %v262_v36, 0  ;;  %v362_v50 = vsel %vm330_vm11, %v266_v38, 0  ;;  %v270_v62 = vld [vmem:[%s945_s3 + $0xf8] sm:$0xff] }
  0x64   : > { %v427_v39 = vshrl.u32 %v392_v31, 16  ;;  %v426_v41 = vand.u32 65535, %v392_v31  ;;  %v385_v44 = vadd.s32 %v381_v37, %v356_v32  ;;  %vm332_vm13 = vcmp.ne.s32.totalorder %v300_v42, 0 }
  0x65   : > { %v374_v53 = vadd.s32 %v370_v46, %v361_v43  ;;  %v363_v56 = vsel %vm331_vm12, %v267_v45, 0  ;;  %vm333_vm14 = vcmp.ne.s32.totalorder %v301_v49, 0  ;;  %v364_v60 = vsel %vm332_vm13, %v268_v52, 0 }
  0x66   : > { %v429_v47 = vcvt.s32.f32 %v427_v39  ;;  %v389_v51 = vadd.s32 %v385_v44, %v357_v40  ;;  %v428_v54 = vcvt.s32.f32 %v426_v41  ;;  %vm334_vm15 = vcmp.ne.s32.totalorder %v302_v55, 0 }
  0x67   : > { %v378_v59 = vadd.s32 %v374_v53, %v362_v50  ;;  %v365_v1 = vsel %vm333_vm14, %v269_v58, 0  ;;  %v366_v5 = vsel %vm334_vm15, %v270_v62, 0  ;;  %vm462_vm0 = vcmask 7168  }
  0x68   : > { %432 = vadd.xlane.f32.xlu0 %v429_v47  ;;  %v393_v57 = vadd.s32 %v389_v51, %v358_v48 }
  0x69   : > { %v382_v63 = vadd.s32 %v378_v59, %v363_v56 }
  0x6a   : > { %v439_v61 = vshrl.u32 %v393_v57, 16  ;;  %v438_v0 = vand.u32 65535, %v393_v57 }
  0x6b   : > { %v386_v3 = vadd.s32 %v382_v63, %v364_v60 }
  0x6c   : > { %430 = vadd.xlane.f32.xlu0 %v428_v54  ;;  %v441_v2 = vcvt.s32.f32 %v439_v61  ;;  %v440_v4 = vcvt.s32.f32 %v438_v0 }
  0x6d   : > { %v390_v6 = vadd.s32 %v386_v3, %v365_v1 }
  0x6e   : > { %444 = vadd.xlane.f32.xlu1 %v441_v2 }
  0x6f   : > { %v394_v7 = vadd.s32 %v390_v6, %v366_v5 }
  0x70   : > { %442 = vadd.xlane.f32.xlu0 %v440_v4 }
  0x71   : > { %v451_v8 = vshrl.u32 %v394_v7, 16  ;;  %v450_v9 = vand.u32 65535, %v394_v7 }
  0x73   : > { %v453_v10 = vcvt.s32.f32 %v451_v8  ;;  %v452_v11 = vcvt.s32.f32 %v450_v9 }
  0x75   : > { %456 = vadd.xlane.f32.xlu1 %v453_v10 }
  0x79   : > { %454 = vadd.xlane.f32.xlu1 %v452_v11 }
  0xf0   : > { %v421_v12 = vpop.xlane.xlu0 %420  ;;  %v419_v13 = vpop.xlane.xlu1 %418 }
  0xf1   : > { %v423_v14 = vcvt.f32.s32 %v421_v12  ;;  %v422_v15 = vcvt.f32.s32 %v419_v13 }
  0xf3   : > { %v424_v16 = vshll.u32 %v423_v14, 16 }
  0xf5   : > { %v425_v17 = vadd.s32 %v424_v16, %v422_v15  ;;  %v433_v18 = vpop.xlane.xlu0 %432 }
  0xf6   : > { %v435_v19 = vcvt.f32.s32 %v433_v18 }
  0xf7   : > { %463 = vst.msk [vmem:[%s229_s6] sm:$0xff] %vm462_vm0, %v425_v17 }
  0xf8   : > { %v436_v21 = vshll.u32 %v435_v19, 16 }
  0xf9   : > { %v431_v20 = vpop.xlane.xlu0 %430 }
  0xfa   : > { %v434_v22 = vcvt.f32.s32 %v431_v20 }
  0xfb   : > { %v445_v23 = vpop.xlane.xlu1 %444 }
  0xfc   : > { %v437_v24 = vadd.s32 %v436_v21, %v434_v22  ;;  %v447_v25 = vcvt.f32.s32 %v445_v23 }
  0xfd   : > { %v443_v26 = vpop.xlane.xlu0 %442 }
  0xfe   : > { %464 = vst.msk [vmem:[%s229_s6 + $0x8] sm:$0xff] %vm462_vm0, %v437_v24  ;;  %v446_v27 = vcvt.f32.s32 %v443_v26  ;;  %v448_v28 = vshll.u32 %v447_v25, 16 }
 0x100   : > { %v449_v29 = vadd.s32 %v448_v28, %v446_v27 }
 0x102   : > { %465 = vst.msk [vmem:[%s229_s6 + $0x10] sm:$0xff] %vm462_vm0, %v449_v29  ;;  %v457_v30 = vpop.xlane.xlu1 %456 }
 0x103   : > { %v459_v31 = vcvt.f32.s32 %v457_v30 }
 0x105   : > { %v460_v32 = vshll.u32 %v459_v31, 16 }
 0x106   : > { %v455_v33 = vpop.xlane.xlu1 %454 }
 0x107   : > { %v458_v34 = vcvt.f32.s32 %v455_v33 }
 0x109   : > { %v461_v35 = vadd.s32 %v460_v32, %v458_v34 }
 0x10b   : > { %466 = vst.msk [vmem:[%s229_s6 + $0x18] sm:$0xff] %vm462_vm0, %v461_v35 }
 0x10c PF: > { %s18_s14 = sadd.s32 1, %s771_s14   ;;  %s1072_s9 = smov %s755_s10 }
 0x10d   : > { %p15_p11 = scmp.ge.s32.totalorder %s18_s14, 4   ;;  %s1073_s10 = smov %s759_s11 }
 0x10e   : > { %s1074_s11 = smov %s841_s21  ;;  %s1075_s12 = smov %s767_s13 }
 0x10f   : > { %s1076_s13 = smov %s1078_s16  ;;  %17 = sbr.rel (!%p15_p11) target bundleno = 6 (0x6), region = 89 }
 0x116   :  { %489 = vsyncpa [#allocation4], 1 }
 0x117   :  { %491 = vsyncpa [#allocation4 + $0x1], 1 }
 0x118   :  { %492 = vsyncpa [#allocation6], 1 }
 0x119   :  { %494 = vsyncpa [#allocation6 + $0x1], 1 }

</bundles_post_ra>
